<compile_context>
chip_gen: v5e
topology: v5e:2x2
jax: 0.10.0
libtpu: 0.0.40
codegen_flags: <defaults>
</compile_context>

<pallas_src>
import functools

import jax
import jax.numpy as jnp
import numpy as np
from jax.experimental import pallas as pl
from jax.experimental.pallas import tpu as pltpu

_LANE = 128
_SUBLANE = 8


def _round_up(x, m):
    return -(-x // m) * m


def _padded_tile_bytes(rows, cols, dtype):
    """VMEM bytes for one (rows, cols) buffer after (8,128) layout padding."""
    return _round_up(rows, _SUBLANE) * _round_up(cols, _LANE) * jnp.dtype(dtype).itemsize


# ----------------------------------------------------------------------------
# Kernel: pixel normalization  out = x * (1/std) + (-mean/std)
# ----------------------------------------------------------------------------
def _normalize_kernel(x_ref, scale_ref, bias_ref, out_ref):
    # x_ref / out_ref : (R, T) tile — R sublane-dense rows of the flattened
    #                   (N*C, H*W) image, T lane-dense spatial chunk.
    # scale_ref / bias_ref : (R, 1) per-row affine columns (lane broadcast).
    x = x_ref[...].astype(jnp.float32)          # in-kernel cast (uint8/bf16/f32)
    y = x * scale_ref[...] + bias_ref[...]      # one whole-tile FMA on the VPU
    out_ref[...] = y.astype(out_ref.dtype)      # one dense store


def normalize_images(images, pixel_mean, pixel_std, *,
                     max_lanes=64 * 1024, out_dtype=jnp.float32):
    """(N, C, H, W) -> (N, C, H, W): (x - mean) / std per channel.

    The math is a reassociated x*(1/std) + (-mean/std) (precomputed affine);
    differences vs. the reference are ~1 ulp.
    """
    assert max_lanes % _LANE == 0
    N, C, H, W = images.shape
    hw = H * W
    rows = N * C

    # Flatten to a sublane-dense slab; no dtype cast here (kernel casts).
    x = images.reshape(rows, hw)

    # Per-row affine: row r = n*C + c  ->  channel c = r % C.
    scale = (1.0 / pixel_std).astype(jnp.float32).reshape(1, C)
    bias = (-pixel_mean / pixel_std).astype(jnp.float32).reshape(1, C)
    scale_col = jnp.broadcast_to(scale, (N, C)).reshape(rows, 1)
    bias_col = jnp.broadcast_to(bias, (N, C)).reshape(rows, 1)

    # ---- tile selection -----------------------------------------------------
    # Row tile: multiple of 8 when possible, else the full (small) row extent.
    row_tile = _SUBLANE if rows % _SUBLANE == 0 else rows

    # Cap lane tile so the double-buffered in+out footprint stays ~<= 12 MiB
    # (well inside v5e's 16 MiB scoped default and far from v7x's 64 MiB VMEM).
    bytes_per_lane = (_round_up(row_tile, _SUBLANE)
                      * (jnp.dtype(images.dtype).itemsize + jnp.dtype(out_dtype).itemsize)
                      * 2)  # double-buffered
    lane_cap = max(_LANE, (12 * 1024 * 1024 // bytes_per_lane) // _LANE * _LANE)
    max_lanes_eff = min(max_lanes, lane_cap)

    padded_hw = hw
    if hw % _LANE == 0:
        tile = min(hw, max_lanes_eff)
        while hw % tile:
            tile -= _LANE
        # v7x megacore: ensure >= 2 grid steps across the "parallel" axes when
        # it is free to do so (single TC chips are unaffected).
        if (rows // row_tile) * (hw // tile) < 2 and hw >= 2 * _LANE and (hw // 2) % _LANE == 0:
            tile = hw // 2
    elif hw <= max_lanes_eff:
        tile = hw  # full-extent lane block: no pad, no mask needed
    else:
        # TODO(synk): mask the ragged tail in-kernel instead of this extra HBM
        # pad/slice pass; rarely hit (detector inputs are padded to
        # size_divisibility so H*W is normally a multiple of 128).
        padded_hw = _round_up(hw, _LANE)
        tile = min(padded_hw, max_lanes_eff)
        while padded_hw % tile:
            tile -= _LANE
        x = jnp.pad(x, ((0, 0), (0, padded_hw - hw)))

    n_row_blocks = rows // row_tile
    n_lane_blocks = padded_hw // tile

    # VMEM budget from the actual (layout-padded, double-buffered) buffers.
    footprint = 2 * (_padded_tile_bytes(row_tile, tile, images.dtype)
                     + _padded_tile_bytes(row_tile, tile, out_dtype)
                     + 2 * _padded_tile_bytes(row_tile, 1, jnp.float32))
    vmem_limit = int(footprint + 4 * 1024 * 1024)  # headroom for compiler scratch

    out = pl.pallas_call(
        _normalize_kernel,
        out_shape=jax.ShapeDtypeStruct((rows, padded_hw), out_dtype),
        grid=(n_row_blocks, n_lane_blocks),
        in_specs=[
            pl.BlockSpec((row_tile, tile), lambda r, t: (r, t)),
            pl.BlockSpec((row_tile, 1), lambda r, t: (r, 0)),
            pl.BlockSpec((row_tile, 1), lambda r, t: (r, 0)),
        ],
        out_specs=pl.BlockSpec((row_tile, tile), lambda r, t: (r, t)),
        compiler_params=pltpu.CompilerParams(
            dimension_semantics=("parallel", "parallel"),
            vmem_limit_bytes=vmem_limit,
        ),
    )(x, scale_col, bias_col)

    if padded_hw != hw:
        out = out[:, :hw]
    return out.reshape(N, C, H, W)


# ----------------------------------------------------------------------------
# compute_locations_per_level: tiny static constant -> host numpy, cached.
#   locations[i*w + j] = (j*stride + stride//2, i*stride + stride//2)
# ----------------------------------------------------------------------------
@functools.lru_cache(maxsize=None)
def _locations_per_level_np(h, w, stride):
    sx = np.arange(0, w * stride, stride, dtype=np.float32)
    sy = np.arange(0, h * stride, stride, dtype=np.float32)
    yy, xx = np.meshgrid(sy, sx, indexing="ij")
    return np.stack([xx.reshape(-1), yy.reshape(-1)], axis=1) + stride // 2


def compute_locations_per_level(h, w, stride):
    # Cache host numpy; convert at the call site so jit/device placement is
    # never pinned by the cache.
    return jnp.asarray(_locations_per_level_np(int(h), int(w), int(stride)))


def compute_locations(feature_sizes, fpn_strides):
    """feature_sizes: list of (h, w) per FPN level."""
    return [compute_locations_per_level(h, w, s)
            for (h, w), s in zip(feature_sizes, fpn_strides)]


# ----------------------------------------------------------------------------
# IENet-style forward glue (only the parts defined in the reference module)
# ----------------------------------------------------------------------------
def ienet_forward(images, pixel_mean, pixel_std, fpn_strides):
    # preprocess_image (ImageList padding skipped: inputs assumed already
    # divisible by the backbone's size_divisibility).
    normed = normalize_images(images, pixel_mean, pixel_std)

    # TODO(synk): features = backbone(normed); prediction = head(features);
    #             losses / box selection / detector_postprocess are registry-built.
    #             A further win would be folding scale/bias into the backbone
    #             stem conv and dropping the standalone normalization pass.
    _, _, H, W = images.shape
    feature_sizes = [(H // s, W // s) for s in fpn_strides]
    locations = compute_locations(feature_sizes, fpn_strides)
    return normed, locations


if __name__ == "__main__":
    key = jax.random.PRNGKey(0)
    N, C, H, W = 2, 3, 32, 32
    images = jax.random.uniform(key, (N, C, H, W), jnp.float32) * 255.0

    # deterministic "cfg.MODEL.PIXEL_MEAN / PIXEL_STD"
    pixel_mean = jnp.array([103.530, 116.280, 123.675], jnp.float32)
    pixel_std = jnp.array([57.375, 57.120, 58.395], jnp.float32)
    fpn_strides = (8, 16)

    normed, locations = ienet_forward(images, pixel_mean, pixel_std, fpn_strides)
    normed = jax.block_until_ready(normed)
    locations = [jax.block_until_ready(l) for l in locations]

    # ---- correctness checks against pure-JAX reference ----
    ref_norm = (images - pixel_mean.reshape(3, 1, 1)) / pixel_std.reshape(3, 1, 1)
    assert normed.shape == (N, C, H, W)
    assert jnp.allclose(normed, ref_norm, atol=1e-5), "normalization mismatch"

    for loc, s in zip(locations, fpn_strides):
        h, w = H // s, W // s
        sx = jnp.arange(0, w * s, s, dtype=jnp.float32)
        sy = jnp.arange(0, h * s, s, dtype=jnp.float32)
        yy, xx = jnp.meshgrid(sy, sx, indexing="ij")
        ref_loc = jnp.stack([xx.reshape(-1), yy.reshape(-1)], axis=1) + s // 2
        assert loc.shape == (h * w, 2)
        assert jnp.allclose(loc, ref_loc), "locations mismatch"

    print("KERNEL_OK")
</pallas_src>

<mosaic_0001>
module attributes {stable_mosaic.version = 11 : i64} {
  func.func @_normalize_kernel(%arg0: i32, %arg1: i32, %arg2: memref<6x512xf32, #tpu.memory_space<vmem>>, %arg3: memref<6x1xf32, #tpu.memory_space<vmem>>, %arg4: memref<6x1xf32, #tpu.memory_space<vmem>>, %arg5: memref<6x512xf32, #tpu.memory_space<vmem>>) attributes {dimension_semantics = [#tpu.dimension_semantics<parallel>, #tpu.dimension_semantics<parallel>], iteration_bounds = array<i64: 1, 2>, scalar_prefetch = 0 : i64, scratch_operands = 0 : i64, tpu.core_type = #tpu.core_type<tc>, window_params = [{transform_indices = @transform_0, window_bounds = array<i64: 6, 512>}, {transform_indices = @transform_1, window_bounds = array<i64: 6, 1>}, {transform_indices = @transform_2, window_bounds = array<i64: 6, 1>}, {transform_indices = @transform_3, window_bounds = array<i64: 6, 512>}]} {
    %c0 = arith.constant 0 : index
    %c0_0 = arith.constant 0 : index
    %0 = vector.load %arg2[%c0, %c0_0] : memref<6x512xf32, #tpu.memory_space<vmem>>, vector<6x512xf32>
    %c0_1 = arith.constant 0 : index
    %c0_2 = arith.constant 0 : index
    %1 = vector.load %arg3[%c0_1, %c0_2] : memref<6x1xf32, #tpu.memory_space<vmem>>, vector<6x1xf32>
    %2 = vector.broadcast %1 : vector<6x1xf32> to vector<6x512xf32>
    %3 = arith.mulf %0, %2 : vector<6x512xf32>
    %c0_3 = arith.constant 0 : index
    %c0_4 = arith.constant 0 : index
    %4 = vector.load %arg4[%c0_3, %c0_4] : memref<6x1xf32, #tpu.memory_space<vmem>>, vector<6x1xf32>
    %5 = vector.broadcast %4 : vector<6x1xf32> to vector<6x512xf32>
    %6 = arith.addf %3, %5 : vector<6x512xf32>
    %c0_5 = arith.constant 0 : index
    %c0_6 = arith.constant 0 : index
    %7 = vector.load %arg5[%c0_5, %c0_6] : memref<6x512xf32, #tpu.memory_space<vmem>>, vector<6x512xf32>
    tpu.vector_store %arg5[%c0_5, %c0_6], %6 {strides = array<i32>} : memref<6x512xf32, #tpu.memory_space<vmem>>, vector<6x512xf32>,
    return
  }
  func.func @transform_0(%arg0: i32, %arg1: i32) -> (i32, i32) {
    %c0_i32 = arith.constant 0 : i32
    return %arg0, %arg1 : i32, i32
  }
  func.func @transform_1(%arg0: i32, %arg1: i32) -> (i32, i32) {
    %c0_i32 = arith.constant 0 : i32
    %c0_i32_0 = arith.constant 0 : i32
    return %arg0, %c0_i32 : i32, i32
  }
  func.func @transform_2(%arg0: i32, %arg1: i32) -> (i32, i32) {
    %c0_i32 = arith.constant 0 : i32
    %c0_i32_0 = arith.constant 0 : i32
    return %arg0, %c0_i32 : i32, i32
  }
  func.func @transform_3(%arg0: i32, %arg1: i32) -> (i32, i32) {
    %c0_i32 = arith.constant 0 : i32
    return %arg0, %arg1 : i32, i32
  }
}

</mosaic_0001>

<bundles_post_ra>
// kernel: tpu_custom_call.1
= control target key start
LH: loop header
LB: loop body
LE: loop exit
PB: predicated region body
PF: predicated region fallthrough
CT: control target
= control target key end

     0   :  { %8 = vsyncpa [#allocation3], 0  ;;  %s748_s0 = inlined_call_operand.hbm [shape: f32[6,1024], index: 0, kind: input, shape index: {}]   ;;  %s749_s1 = inlined_call_operand.vmem [shape: f32[6,1], index: 1, kind: input, shape index: {}]   ;;  %s750_s2 = inlined_call_operand.vmem [shape: f32[6,1], index: 2, kind: input, shape index: {}]   ;;  %s751_s3 = inlined_call_operand.hbm [shape: f32[6,1024], index: 3, kind: output, shape index: {}]  }
   0x1   :  { %10 = vsyncpa [#allocation3 + $0x1], 0 }
   0x2   :  { %11 = vsyncpa [#allocation4], 0 }
   0x3   :  { %13 = vsyncpa [#allocation4 + $0x1], 0  ;;  %s622_s12 = smov 0   ;;  %s624_s13 = smov 0  }
   0x4   :  { %s626_s14 = smov 0   ;;  %s628_s15 = smov 0  }
   0x5   :  { %s630_s16 = smov 0   ;;  %s632_s17 = smov 0  }
   0x6 LB: > { %s404_s18 = sadd.s32 4294967295, %s599_s17   ;;  %s405_s19 = sadd.s32 4294967294, %s599_s17   ;;  %s599_s17 = sphi %s632_s17, %s19_s17   ;;  %s595_s16 = sphi %s630_s16, %s760_s16   ;;  %s591_s15 = sphi %s628_s15, %s759_s15   ;;  %s587_s14 = sphi %s626_s14, %s758_s14   ;;  %s583_s13 = sphi %s624_s13, %s757_s13   ;;  %s579_s12 = sphi %s622_s12, %s756_s12  }
   0x7   : > { %s28_s20 = sadd.s32 1, %s595_s16  ;;  %s40_s21 = sadd.s32 1, %s587_s14 }
   0x8   : > { %p29_p0 = scmp.ge.s32.totalorder %s28_s20, 2  ;;  %p47_p1 = scmp.ne.s32.totalorder %s587_s14, %s583_s13 }
   0x9   : > { %p48_p2 = scmp.eq.s32.totalorder %s599_s17, 0  ;;  %p53_p3 = scmp.ne.s32.totalorder %s583_s13, %s579_s12 }
   0xa   : > { %s762_s20 = smov (%p29_p0, %s28_s20), 0  ;;  %p54_p5 = scmp.eq.s32.totalorder %s404_s18, 0 }
   0xb   : > { %p663_p4 = por %p48_p2, %p47_p1  ;;  %s36_s23 = ssub.s32 %s595_s16, %s762_s20 }
   0xc   : > { %p131_p6 = scmp.eq.s32.totalorder %s404_s18, 1  ;;  %p38_p7 = scmp.eq.s32.totalorder %s36_s23, 0 }
   0xd   : > { %p669_p8 = por %p54_p5, %p53_p3  ;;  %p137_p10 = scmp.eq.s32.totalorder %s405_s19, 1 }
   0xe   : > { %p673_p9 = por %p131_p6, %p47_p1  ;;  %p409_p12 = scmp.ge.s32.totalorder %s599_s17, 2 }
   0xf   : > { %s678_s26 = scalar_select %p38_p7, %s587_s14, %s40_s21  }
  0x10   : > { %p680_p11 = por %p137_p10, %p53_p3  ;;  %p435_p13 = scmp.lt.s32.totalorder %s599_s17, 2 }
  0x11   : > { %s171_s28 = sand.u32 1, %s587_s14   ;;  %s421_s30 = sshll.u32 %s595_s16, 5 }
  0x12   : > { %s410_s29 = sshll.u32 %s171_s28, 5  ;;  %s182_s6 = scalar_lea.hbm %s748_s0, %s421_s30 }
  0x13   : > { %s175_s7 = scalar_lea.vmem [#allocation2], %s410_s29  ;;  %s184_s9 = sshll.u32 %s182_s6, 4  ;;  %s185_s9 = int_to_ptr.hbm [resolvable:$true] %s184_s9 }
  0x14   : > { %s186_s8 = sshll.u32 %s175_s7, 4  ;;  %p428_p0 = pnand %p435_p13, %p663_p4  ;;  %s187_s8 = int_to_ptr.vmem [resolvable:$true] %s186_s8 }
  0x15   : > { %p413_p1 = scmp.ge.s32.totalorder %s599_s17, 1  ;;  %p191_p2 = scmp.lt.s32.totalorder %s599_s17, 3 }
  0x16   : > { %s172_s10 = scalar_lea.sflag [#allocation3], %s171_s28 }
  0x17   : > { %430 = dma.hbm_to_vmem [thread:$0]  (!%p428_p0), %s185_s9, 512, %s187_s8, %s172_s10  }
  0x18   : > { %p192_p3 = pnand %p413_p1, %p191_p2 }
  0x19   : > { %s696_s11 = sand.u32 (!%p192_p3), 1, %s583_s13  }
  0x1a   : > { %195 = sbr.rel (%p192_p3) target bundleno = 165 (0xa5), region = 32  ;;  %s414_s18 = sshll.u32 (!%p192_p3), %s696_s11, 5 }
  0x1b   : > { %s198_s19 = scalar_lea.sflag (!%p192_p3), [#allocation3], %s696_s11  ;;  %s201_s21 = scalar_lea.vmem (!%p192_p3), [#allocation2], %s414_s18 }
  0x1f   : > { %570 = dma.done.wait (%p669_p8), %s198_s19, 512  }
  0x20   : > { %572 = vsyncadd (%p669_p8), %s198_s19, 4294966784  ;;  %v601_v0 = vmov 0   ;;  %v247_v1 = vld [vmem:[%s749_s1] sm:$0x3f]  ;;  %s422_s30 = sshll.u32 %s591_s15, 5  ;;  %s232_s6 = scalar_lea.vmem [#allocation5], %s414_s18 }
  0x21   : > { %486 = vset.pattern.permute.xlu0 %v601_v0  ;;  %v257_v2 = vld [vmem:[%s750_s2] sm:$0x3f]  ;;  %v244_v5 = vld [vmem:[%s201_s21 + $0x8] sm:$0x3f]  ;;  %v245_v6 = vld [vmem:[%s201_s21 + $0x10] sm:$0x3f]  ;;  %s285_s5 = scalar_lea.hbm %s751_s3, %s422_s30 }
  0x22   : > { %250 = vperm.xlu0 %486, %v247_v1   ;;  %v243_v4 = vld [vmem:[%s201_s21] sm:$0x3f]  ;;  %v246_v7 = vld [vmem:[%s201_s21 + $0x18] sm:$0x3f]  ;;  %s287_s15 = sshll.u32 %s232_s6, 4  ;;  %s289_s7 = sshll.u32 %s285_s5, 4  ;;  %s288_s15 = int_to_ptr.vmem [resolvable:$true] %s287_s15  ;;  %s290_s7 = int_to_ptr.hbm [resolvable:$true] %s289_s7 }
  0x23   : > { %s272_s8 = scalar_lea.sflag [#allocation4], %s696_s11  ;;  %s531_s9 = sshra.s32 %s290_s7, 4  ;;  %s532_s9 = int_to_ptr.hbm [resolvable:$true] %s531_s9 }
  0x24   : > { %s533_s10 = scalar_lea.hbm %s532_s9, 32  ;;  %s537_s18 = scalar_lea.hbm %s751_s3, 64 }
  0x25   : > { %p534_p4 = scmp.ne.s32.totalorder %s532_s9, %s533_s10  ;;  %p538_p7 = scmp.lt.s32.totalorder %s532_s9, %s751_s3 }
  0x26   : > { %p539_p8 = scmp.lt.s32.totalorder %s537_s18, %s533_s10 }
  0x27   : > { %p535_p5 = pnand %p534_p4, %p673_p9 }
  0x28   : > { %p540_p10 = por %p539_p8, %p538_p7 }
  0x29   : > { %p536_p6 = pneg %p535_p5 }
  0x2a   : > { %260 = vperm.xlu0 %486, %v257_v2  }
  0x2b   : > { %p541_p13 = pnand %p540_p10, %p536_p6 }
  0x94   : > { %v251_v3 = vpop.permute.xlu0 %250 }
  0x95   : > { %v253_v8 = vmul.f32 %v251_v3, %v243_v4  ;;  %v254_v9 = vmul.f32 %v251_v3, %v244_v5  ;;  %v255_v10 = vmul.f32 %v251_v3, %v245_v6  ;;  %v256_v12 = vmul.f32 %v251_v3, %v246_v7 }
  0x9c   : > { %v261_v11 = vpop.permute.xlu0 %260 }
  0x9d   : > { %v263_v13 = vadd.f32 %v261_v11, %v253_v8  ;;  %v264_v14 = vadd.f32 %v261_v11, %v254_v9  ;;  %v265_v15 = vadd.f32 %v261_v11, %v255_v10  ;;  %v266_v16 = vadd.f32 %v261_v11, %v256_v12 }
  0x9f   : > { %267 = vst [vmem:[%s232_s6] sm:$0x3f] %v263_v13 }
  0xa0   : > { %268 = vst [vmem:[%s232_s6 + $0x8] sm:$0x3f] %v264_v14 }
  0xa1   : > { %269 = vst [vmem:[%s232_s6 + $0x10] sm:$0x3f] %v265_v15 }
  0xa2   : > { %270 = vst [vmem:[%s232_s6 + $0x18] sm:$0x3f] %v266_v16 }
  0xa3   : > { %544 = shalt.err (!%p541_p13)
}
  0xa4   : > { %425 = dma.vmem_to_hbm [thread:$0]  (%p673_p9), %s288_s15, 512, %s290_s7, %s272_s8  }
  0xa5 PF: > { %s301_s11 = sand.u32 1, %s579_s12   ;;  %p432_p0 = pnand %p409_p12, %p680_p11 }
  0xa6   : > { %s302_s28 = scalar_lea.sflag [#allocation4], %s301_s11 }
  0xa7   : > { %p433_p1 = pneg %p432_p0 }
  0xa9   : > { %574 = dma.done.wait (%p433_p1), %s302_s28, 512  }
  0xaa   : > { %576 = vsyncadd (%p433_p1), %s302_s28, 4294966784  ;;  %s19_s17 = sadd.s32 1, %s599_s17   ;;  %s756_s12 = smov %s583_s13 }
  0xab   : > { %p16_p2 = scmp.ge.s32.totalorder %s19_s17, 4   ;;  %s757_s13 = smov %s587_s14 }
  0xac   : > { %s758_s14 = smov %s678_s26  ;;  %s759_s15 = smov %s595_s16 }
  0xad   : > { %s760_s16 = smov %s762_s20  ;;  %18 = sbr.rel (!%p16_p2) target bundleno = 6 (0x6), region = 83 }
  0xb2   :  { %308 = vsyncpa [#allocation3], 1 }
  0xb3   :  { %310 = vsyncpa [#allocation3 + $0x1], 1 }
  0xb4   :  { %311 = vsyncpa [#allocation4], 1 }
  0xb5   :  { %313 = vsyncpa [#allocation4 + $0x1], 1 }

</bundles_post_ra>
